<compile_context>
chip_gen: v7x
topology: tpu7x:2x2x1
jax: 0.10.0
libtpu: 0.0.40
codegen_flags: <defaults>
</compile_context>

<pallas_src>
import math
from functools import partial

import jax
import jax.numpy as jnp
from jax.experimental import pallas as pl
from jax.experimental.pallas import tpu as pltpu


def resb_kernel(x_ref, w_ref, b_ref, o_ref, *, K, pad, L, R, total_rows, ragged):
    # x_ref: (R, L)     rows are (batch, channel) length-L segments, R = NB*C
    # w_ref: (K, R, R)  per-tap block-diagonal kron(I_NB, W_k) weight (BN + identity fused)
    # b_ref: (R, 1)     fused per-channel bias, tiled over the NB batch groups
    x = x_ref[...].astype(jnp.float32)

    if ragged:
        # Last grid block may extend past the array: zero the invalid rows so that
        # (0-weight * garbage) cannot inject NaNs into valid rows through the MXU.
        rows_valid = total_rows - pl.program_id(0) * R
        row = jax.lax.broadcasted_iota(jnp.int32, (R, 1), 0)
        x = jnp.where(row < rows_valid, x, 0.0)

    # Center tap first (identity path is already folded into its diagonal).
    acc = jnp.dot(w_ref[pad], x, preferred_element_type=jnp.float32)   # (R, L)

    if K > 1:
        lane = jax.lax.broadcasted_iota(jnp.int32, (1, L), 1)          # hoisted once
        for k in range(K):                                             # static -> unrolled
            if k == pad:
                continue
            s = k - pad                                  # output lane l reads x[:, l + s]
            xs = pltpu.roll(x, shift=(-s) % L, axis=1)   # == jnp.roll(x, -s, axis=-1)
            mask = (lane < L - s) if s > 0 else (lane >= -s)   # zero the wrapped halo
            xs = jnp.where(mask, xs, 0.0)
            acc = acc + jnp.dot(w_ref[k], xs, preferred_element_type=jnp.float32)

    out = jnp.maximum(acc + b_ref[...], 0.0)             # bias + ReLU; Dropout(eval) == id
    o_ref[...] = out.astype(o_ref.dtype)


def resb_forward(x, weight, bn1, bn2, *, pad, eps=1e-5):
    """x: (N, C, L).  weight: (C_out, C_in, K) (PyTorch Conv1d layout, bias=False).
    bn1/bn2 = (gamma, beta, running_mean, running_var)."""
    N, C, L = x.shape
    C_out, C_in, K = weight.shape
    assert C_out == C and C_in == C
    assert K - 1 == 2 * pad, "kernel/pad must preserve sequence length"

    f32 = jnp.float32
    g1, be1, m1, v1 = (a.astype(f32) for a in bn1)
    g2, be2, m2, v2 = (a.astype(f32) for a in bn2)
    s1 = g1 * jax.lax.rsqrt(v1 + eps)
    b1 = be1 - m1 * s1
    s2 = g2 * jax.lax.rsqrt(v2 + eps)
    b2 = be2 - m2 * s2

    # Fold BN1*BN2 into the conv weight and the residual identity into the center tap.
    w_total = weight.astype(f32) * (s1 * s2)[:, None, None]             # (C, C, K)
    center = (jnp.arange(K) == pad).astype(f32)                         # (K,)
    w_total = w_total + s2[:, None, None] * jnp.eye(C, dtype=f32)[:, :, None] * center
    bias = s2 * b1 + b2                                                  # (C,)

    # Free relayout (no HBM transpose): each row of x2 is one (batch, channel) segment.
    x2 = x.reshape(N * C, L)
    total_rows = N * C
    itemsize = jnp.dtype(x.dtype).itemsize

    # Rows-per-block R = NB*C.  NB is capped by an x-block byte budget, by R_CAP (keeps the
    # block-diagonal weight + MXU inflation small), by ">= 2 grid steps" when N > 1
    # (pipelining / megacore), and must give R % 8 == 0 unless the block spans all rows.
    R_CAP = 512
    X_BLOCK_BUDGET = 2 << 20
    sub = 8 // math.gcd(C, 8)                      # NB granularity so that R % 8 == 0
    nb = min(N,
             max(1, X_BLOCK_BUDGET // (C * L * itemsize)),
             max(1, R_CAP // C))
    if N > 1:
        nb = min(nb, max(1, (N + 1) // 2))         # at least 2 grid steps
    nb = (nb // sub) * sub
    if nb <= 0 or (nb * C) % 8 != 0:
        nb = N                                     # fallback: one block = all rows (full dim)
    NB = nb
    R = NB * C
    grid = (pl.cdiv(N, NB),)
    ragged = (N % NB) != 0

    # Per-tap block-diagonal weight kron(I_NB, W_k): one MXU dot mixes channels for all NB
    # batch segments in a block.  Constant block index -> DMA'd once, resident in VMEM.
    wk = jnp.transpose(w_total, (2, 0, 1))                               # (K, C_out, C_in)
    w_bd = jnp.einsum("ab,koi->kaobi", jnp.eye(NB, dtype=f32), wk).reshape(K, R, R)
    bias_rows = jnp.tile(bias, NB).reshape(R, 1)

    kernel = partial(resb_kernel, K=K, pad=pad, L=L, R=R,
                     total_rows=total_rows, ragged=ragged)

    flops = 2 * K * R * R * L * grid[0]            # MXU work actually issued
    bytes_accessed = (2 * total_rows * L) * itemsize + w_bd.size * 4 + bias_rows.size * 4

    out2 = pl.pallas_call(
        kernel,
        out_shape=jax.ShapeDtypeStruct((total_rows, L), x.dtype),
        grid=grid,
        in_specs=[
            pl.BlockSpec((R, L), lambda g: (g, 0)),        # x rows for this batch block
            pl.BlockSpec((K, R, R), lambda g: (0, 0, 0)),  # fused block-diag weight (resident)
            pl.BlockSpec((R, 1), lambda g: (0, 0)),        # fused per-channel bias (resident)
        ],
        out_specs=pl.BlockSpec((R, L), lambda g: (g, 0)),
        compiler_params=pltpu.CompilerParams(dimension_semantics=("parallel",)),
        cost_estimate=pl.CostEstimate(flops=flops, transcendentals=0,
                                      bytes_accessed=bytes_accessed),
    )(x2, w_bd, bias_rows)

    return out2.reshape(N, C, L)                   # free reshape back to (N, C, L)


def resb_reference(x, weight, bn1, bn2, *, pad, eps=1e-5):
    """Plain-JAX reference for correctness checking (eval-mode ResB)."""
    def fold(gamma, beta, mean, var):
        inv = gamma / jnp.sqrt(var + eps)
        return inv.reshape(1, -1, 1), (beta - mean * inv).reshape(1, -1, 1)

    s1, b1 = fold(*bn1)
    s2, b2 = fold(*bn2)
    out = jax.lax.conv_general_dilated(
        x, weight, window_strides=(1,), padding=[(pad, pad)],
        dimension_numbers=("NCH", "OIH", "NCH"))
    out = out * s1 + b1
    out = out + x
    out = out * s2 + b2
    return jnp.maximum(out, 0.0)


if __name__ == "__main__":
    # Small shapes consistent with ResB(num_filters=8, kernel=3, pad=1)
    N, C, L, K, PAD = 2, 8, 128, 3, 1

    key = jax.random.PRNGKey(0)
    kx, kw, kg1, kb1, km1, kv1, kg2, kb2, km2, kv2 = jax.random.split(key, 10)

    x = jax.random.normal(kx, (N, C, L), dtype=jnp.float32)
    weight = jax.random.normal(kw, (C, C, K), dtype=jnp.float32) * 0.1  # Conv1d (O, I, K)

    bn1 = (jax.random.normal(kg1, (C,), jnp.float32) * 0.1 + 1.0,   # gamma
           jax.random.normal(kb1, (C,), jnp.float32) * 0.1,          # beta
           jax.random.normal(km1, (C,), jnp.float32) * 0.1,          # running_mean
           jnp.abs(jax.random.normal(kv1, (C,), jnp.float32)) + 0.5) # running_var
    bn2 = (jax.random.normal(kg2, (C,), jnp.float32) * 0.1 + 1.0,
           jax.random.normal(kb2, (C,), jnp.float32) * 0.1,
           jax.random.normal(km2, (C,), jnp.float32) * 0.1,
           jnp.abs(jax.random.normal(kv2, (C,), jnp.float32)) + 0.5)

    out = resb_forward(x, weight, bn1, bn2, pad=PAD)
    out = jax.block_until_ready(out)

    ref = resb_reference(x, weight, bn1, bn2, pad=PAD)
    assert out.shape == (N, C, L)
    assert jnp.allclose(out, ref, atol=1e-4, rtol=1e-3), "mismatch vs reference"

    print("KERNEL_OK")
</pallas_src>

<mosaic_0001>
module attributes {stable_mosaic.version = 11 : i64} {
  func.func @resb_kernel(%arg0: i32, %arg1: memref<8x128xf32, #tpu.memory_space<vmem>>, %arg2: memref<3x8x8xf32, #tpu.memory_space<vmem>>, %arg3: memref<8x1xf32, #tpu.memory_space<vmem>>, %arg4: memref<8x128xf32, #tpu.memory_space<vmem>>) attributes {dimension_semantics = [#tpu.dimension_semantics<parallel>], iteration_bounds = array<i64: 2>, scalar_prefetch = 0 : i64, scratch_operands = 0 : i64, tpu.core_type = #tpu.core_type<tc>, window_params = [{transform_indices = @transform_0, window_bounds = array<i64: 8, 128>}, {pipeline_mode = #tpu.pipeline_mode<synchronous>, transform_indices = @transform_1, window_bounds = array<i64: 3, 8, 8>}, {pipeline_mode = #tpu.pipeline_mode<synchronous>, transform_indices = @transform_2, window_bounds = array<i64: 8, 1>}, {transform_indices = @transform_3, window_bounds = array<i64: 8, 128>}]} {
    %c0 = arith.constant 0 : index
    %c0_0 = arith.constant 0 : index
    %0 = vector.load %arg1[%c0, %c0_0] : memref<8x128xf32, #tpu.memory_space<vmem>>, vector<8x128xf32>
    %c1 = arith.constant 1 : index
    %c0_1 = arith.constant 0 : index
    %c0_2 = arith.constant 0 : index
    %1 = vector.load %arg2[%c1, %c0_1, %c0_2] : memref<3x8x8xf32, #tpu.memory_space<vmem>>, vector<1x8x8xf32>
    %2 = vector.shape_cast %1 : vector<1x8x8xf32> to vector<8x8xf32>
    %cst = arith.constant dense<0.000000e+00> : vector<8x128xf32>
    %3 = tpu.matmul %2, %0, %cst {dimension_numbers = #tpu.dot_dimension_numbers<[1], [0], [0], [1], [0, 0, 1, 1], [], []>} : vector<8x8xf32>, vector<8x128xf32>, vector<8x128xf32> -> vector<8x128xf32>
    %4 = tpu.iota {dimensions = array<i32: 1>} : vector<1x128xi32>
    %c1_i32 = arith.constant 1 : i32
    %5 = tpu.dynamic_rotate %0 by %c1_i32 dim 1 : vector<8x128xf32>, i32 -> vector<8x128xf32>
    %c1_i32_3 = arith.constant 1 : i32
    %6 = vector.broadcast %c1_i32_3 : i32 to vector<1x128xi32>
    %7 = arith.cmpi sge, %4, %6 : vector<1x128xi32>
    %cst_4 = arith.constant 0.000000e+00 : f32
    %8 = vector.shape_cast %7 : vector<1x128xi1> to vector<1x128xi1>
    %9 = vector.broadcast %8 : vector<1x128xi1> to vector<8x128xi1>
    %10 = vector.broadcast %cst_4 : f32 to vector<8x128xf32>
    %11 = arith.select %9, %5, %10 : vector<8x128xi1>, vector<8x128xf32>
    %c0_5 = arith.constant 0 : index
    %c0_6 = arith.constant 0 : index
    %c0_7 = arith.constant 0 : index
    %12 = vector.load %arg2[%c0_5, %c0_6, %c0_7] : memref<3x8x8xf32, #tpu.memory_space<vmem>>, vector<1x8x8xf32>
    %13 = vector.shape_cast %12 : vector<1x8x8xf32> to vector<8x8xf32>
    %cst_8 = arith.constant dense<0.000000e+00> : vector<8x128xf32>
    %14 = tpu.matmul %13, %11, %cst_8 {dimension_numbers = #tpu.dot_dimension_numbers<[1], [0], [0], [1], [0, 0, 1, 1], [], []>} : vector<8x8xf32>, vector<8x128xf32>, vector<8x128xf32> -> vector<8x128xf32>
    %15 = arith.addf %3, %14 : vector<8x128xf32>
    %c127_i32 = arith.constant 127 : i32
    %16 = tpu.dynamic_rotate %0 by %c127_i32 dim 1 : vector<8x128xf32>, i32 -> vector<8x128xf32>
    %c127_i32_9 = arith.constant 127 : i32
    %17 = vector.broadcast %c127_i32_9 : i32 to vector<1x128xi32>
    %18 = arith.cmpi slt, %4, %17 : vector<1x128xi32>
    %cst_10 = arith.constant 0.000000e+00 : f32
    %19 = vector.shape_cast %18 : vector<1x128xi1> to vector<1x128xi1>
    %20 = vector.broadcast %19 : vector<1x128xi1> to vector<8x128xi1>
    %21 = vector.broadcast %cst_10 : f32 to vector<8x128xf32>
    %22 = arith.select %20, %16, %21 : vector<8x128xi1>, vector<8x128xf32>
    %c2 = arith.constant 2 : index
    %c0_11 = arith.constant 0 : index
    %c0_12 = arith.constant 0 : index
    %23 = vector.load %arg2[%c2, %c0_11, %c0_12] : memref<3x8x8xf32, #tpu.memory_space<vmem>>, vector<1x8x8xf32>
    %24 = vector.shape_cast %23 : vector<1x8x8xf32> to vector<8x8xf32>
    %cst_13 = arith.constant dense<0.000000e+00> : vector<8x128xf32>
    %25 = tpu.matmul %24, %22, %cst_13 {dimension_numbers = #tpu.dot_dimension_numbers<[1], [0], [0], [1], [0, 0, 1, 1], [], []>} : vector<8x8xf32>, vector<8x128xf32>, vector<8x128xf32> -> vector<8x128xf32>
    %26 = arith.addf %15, %25 : vector<8x128xf32>
    %c0_14 = arith.constant 0 : index
    %c0_15 = arith.constant 0 : index
    %27 = vector.load %arg3[%c0_14, %c0_15] : memref<8x1xf32, #tpu.memory_space<vmem>>, vector<8x1xf32>
    %28 = vector.broadcast %27 : vector<8x1xf32> to vector<8x128xf32>
    %29 = arith.addf %26, %28 : vector<8x128xf32>
    %cst_16 = arith.constant 0.000000e+00 : f32
    %30 = vector.broadcast %cst_16 : f32 to vector<8x128xf32>
    %31 = arith.maximumf %29, %30 : vector<8x128xf32>
    %c0_17 = arith.constant 0 : index
    %c0_18 = arith.constant 0 : index
    %32 = vector.load %arg4[%c0_17, %c0_18] : memref<8x128xf32, #tpu.memory_space<vmem>>, vector<8x128xf32>
    tpu.vector_store %arg4[%c0_17, %c0_18], %31 {strides = array<i32>} : memref<8x128xf32, #tpu.memory_space<vmem>>, vector<8x128xf32>,
    return
  }
  func.func @transform_0(%arg0: i32) -> (i32, i32) {
    %c0_i32 = arith.constant 0 : i32
    %c0_i32_0 = arith.constant 0 : i32
    return %arg0, %c0_i32 : i32, i32
  }
  func.func @transform_1(%arg0: i32) -> (i32, i32, i32) {
    %c0_i32 = arith.constant 0 : i32
    %c0_i32_0 = arith.constant 0 : i32
    %c0_i32_1 = arith.constant 0 : i32
    %c0_i32_2 = arith.constant 0 : i32
    return %c0_i32, %c0_i32_0, %c0_i32_1 : i32, i32, i32
  }
  func.func @transform_2(%arg0: i32) -> (i32, i32) {
    %c0_i32 = arith.constant 0 : i32
    %c0_i32_0 = arith.constant 0 : i32
    %c0_i32_1 = arith.constant 0 : i32
    return %c0_i32, %c0_i32_0 : i32, i32
  }
  func.func @transform_3(%arg0: i32) -> (i32, i32) {
    %c0_i32 = arith.constant 0 : i32
    %c0_i32_0 = arith.constant 0 : i32
    return %arg0, %c0_i32 : i32, i32
  }
}

</mosaic_0001>

<bundles_post_ra>
// kernel: tpu_custom_call.1
= control target key start
LH: loop header
LB: loop body
LE: loop exit
PB: predicated region body
PF: predicated region fallthrough
CT: control target
= control target key end

     0   :  { %8 = vsyncpa [#allocation3], 0  ;;  %s1020_s0 = inlined_call_operand.hbm [shape: f32[16,128], index: 0, kind: input, shape index: {}]   ;;  %s1021_s1 = inlined_call_operand.hbm [shape: f32[3,8,8], index: 1, kind: input, shape index: {}]   ;;  %s1022_s2 = inlined_call_operand.vmem [shape: f32[8,1], index: 2, kind: input, shape index: {}]   ;;  %s1023_s3 = inlined_call_operand.hbm [shape: f32[16,128], index: 3, kind: output, shape index: {}]  }
   0x1   :  { %10 = vsyncpa [#allocation3 + $0x1], 0 }
   0x2   :  { %11 = vsyncpa [#allocation6], 0 }
   0x3   :  { %12 = vsyncpa [#allocation4], 0 }
   0x4   :  { %14 = vsyncpa [#allocation4 + $0x1], 0  ;;  %s811_s12 = smov 0   ;;  %s813_s13 = smov 0  }
   0x5   :  { %s815_s14 = smov 0   ;;  %s817_s15 = smov 0  }
   0x6 LB: > { %s832_s16 = sadd.s32 4294967295, %s779_s15   ;;  %s545_s17 = sadd.s32 4294967294, %s779_s15   ;;  %s779_s15 = sphi %s817_s15, %s1043_s15   ;;  %s775_s14 = sphi %s815_s14, %s1042_s14   ;;  %s771_s13 = sphi %s813_s13, %s1041_s13   ;;  %s767_s12 = sphi %s811_s12, %s1040_s12  }
   0x7   : > { %p40_p0 = scmp.ne.s32.totalorder %s771_s13, %s767_s12  ;;  %p1024_p1 = scmp.eq.s32.totalorder %s832_s16, 0 }
   0x8   : > { %p112_p3 = scmp.eq.s32.totalorder %s545_s17, 1  ;;  %p546_p5 = scmp.ge.s32.totalorder %s779_s15, 1 }
   0x9   : > { %p841_p4 = por %p1024_p1, %p40_p0  ;;  %p119_p7 = scmp.lt.s32.totalorder %s779_s15, 3 }
   0xa   : > { %p846_p6 = por %p112_p3, %p40_p0  ;;  %s781_s21 = smov [#allocation5]  }
   0xb   : > { %s1027_s18 = scalar_select %p841_p4, 1, 0 }
   0xc   : > { %s1028_s19 = scalar_select %p846_p6, 1, 0 }
   0xd   : > { %p851_p8 = pnand %p546_p5, %p119_p7  ;;  %s131_s22 = sshll.u32 %s781_s21, 4  ;;  %s855_s22 = int_to_ptr.vmem [resolvable:$true] %s131_s22 }
   0xe   : > { %s867_s24 = sadd.s32 1, %s779_s15   ;;  %s27_s25 = sadd.s32 1, %s775_s14 }
   0xf   : > { %s1029_s20 = scalar_select %p851_p8, 1, 0 }
  0x10   : > { %p593_p9 = pneg %p851_p8  ;;  %s24_s26 = ssub.s32 %s779_s15, %s867_s24 }
  0x11   : > { %s651_s29 = scalar_lea.hbm %s1021_s1, 384 }
  0x12   : > { %p862_p11 = pnand %p593_p9, %p1024_p1  ;;  %p652_p12 = scmp.ne.s32.totalorder %s1021_s1, %s651_s29 }
  0x13   : > { %p658_p5 = scmp.lt.u32.totalorder %s651_s29, %s1021_s1 }
  0x14   : > { %p653_p13 = pneg %p862_p11 }
  0x16   : > { %p654_p0 = pnand %p653_p13, %p652_p12 }
  0x18   : > { %p655_p3 = pneg %p654_p0 }
  0x1a   : > { %p660_p7 = pnand %p658_p5, %p655_p3 }
  0x1c   : > { %663 = shalt.err (!%p660_p7)
}
  0x1d   : > { %s664_s7 = scalar_lea.vmem %s855_s22, 384  ;;  %p672_p2 = scmp.lt.s32.totalorder %s855_s22, %s855_s22 }
  0x1e   : > { %p665_p9 = scmp.ne.s32.totalorder %s855_s22, %s664_s7  ;;  %p673_p6 = scmp.lt.s32.totalorder %s664_s7, %s664_s7 }
  0x20   : > { %p667_p10 = pnand %p665_p9, %p653_p13  ;;  %p674_p4 = por %p673_p6, %p672_p2 }
  0x22   : > { %p668_p1 = pneg %p667_p10 }
  0x24   : > { %p675_p8 = pnand %p674_p4, %p668_p1 }
  0x26   : > { %678 = shalt.err (!%p675_p8)
}
  0x27   : > { %s782_s8 = smov 128   ;;  %s783_s9 = smov 8  }
  0x28   : > { %596 = dma.hbm_to_vmem [thread:$0]  (!%p862_p11), %s1021_s1, 384, %s855_s22, [#allocation6], %s782_s8, %s782_s8, %s783_s9  }
  0x29   : > { %p25_p2 = scmp.eq.s32.totalorder %s24_s26, 0  ;;  %p34_p1 = scmp.ne.s32.totalorder %s775_s14, %s771_s13 }
  0x2a   : > { %p35_p4 = scmp.eq.s32.totalorder %s779_s15, 0  ;;  %p606_p6 = scmp.lt.s32.totalorder %s779_s15, 2 }
  0x2b   : > { %s898_s17 = scalar_select %p25_p2, %s775_s14, %s27_s25  }
  0x2c   : > { %p36_p8 = por %p35_p4, %p34_p1  ;;  %p1031_p10 = scmp.eq.s32.totalorder %s832_s16, 1 }
  0x2d   : > { %s148_s27 = sand.u32 1, %s775_s14   ;;  %s550_s28 = sshll.u32 %s779_s15, 7 }
  0x2e   : > { %p902_p12 = por %p1031_p10, %p34_p1  ;;  %s549_s29 = sshll.u32 %s148_s27, 3 }
  0x2f   : > { %s911_s4 = scalar_lea.hbm %s1020_s0, %s550_s28  ;;  %s152_s22 = scalar_lea.vmem [#allocation2], %s549_s29 }
  0x30   : > { %s159_s25 = sshll.u32 %s152_s22, 4  ;;  %p913_p11 = pnand %p606_p6, %p36_p8  ;;  %s917_s25 = int_to_ptr.vmem [resolvable:$true] %s159_s25 }
  0x31   : > { %s149_s5 = scalar_lea.sflag [#allocation3], %s148_s27  ;;  %s679_s6 = scalar_lea.hbm %s911_s4, 128 }
  0x32   : > { %p680_p13 = scmp.ne.s32.totalorder %s911_s4, %s679_s6  ;;  %p681_p0 = pneg %p913_p11 }
  0x33   : > { %s684_s9 = scalar_lea.hbm %s1020_s0, 256  ;;  %p685_p7 = scmp.lt.u32.totalorder %s911_s4, %s1020_s0 }
  0x34   : > { %p682_p3 = pnand %p681_p0, %p680_p13  ;;  %p686_p9 = scmp.lt.u32.totalorder %s684_s9, %s679_s6 }
  0x35   : > { %p688_p1 = scmp.lt.u32.totalorder %s679_s6, %s911_s4 }
  0x36   : > { %p683_p5 = pneg %p682_p3  ;;  %p687_p2 = por %p686_p9, %p685_p7 }
  0x38   : > { %p689_p4 = por %p688_p1, %p687_p2 }
  0x3a   : > { %p690_p6 = pnand %p689_p4, %p683_p5 }
  0x3c   : > { %693 = shalt.err (!%p690_p6)
}
  0x3d   : > { %s694_s27 = scalar_lea.vmem %s917_s25, 128  ;;  %s784_s28 = smov [#allocation2]  }
  0x3e   : > { %p695_p8 = scmp.ne.s32.totalorder %s917_s25, %s694_s27  ;;  %s699_s29 = sshll.u32 %s784_s28, 4  ;;  %s700_s29 = int_to_ptr.vmem [resolvable:$false] %s699_s29 }
  0x3f   : > { %s701_s23 = scalar_lea.vmem %s700_s29, 256  ;;  %p702_p3 = scmp.lt.s32.totalorder %s917_s25, %s700_s29 }
  0x40   : > { %p697_p10 = pnand %p695_p8, %p681_p0  ;;  %p703_p7 = scmp.lt.s32.totalorder %s701_s23, %s694_s27 }
  0x42   : > { %p698_p13 = pneg %p697_p10  ;;  %p704_p9 = por %p703_p7, %p702_p3 }
  0x44   : > { %p705_p2 = pnand %p704_p9, %p698_p13 }
  0x46   : > { %708 = shalt.err (!%p705_p2)
}
  0x47   : > { %600 = dma.hbm_to_vmem [thread:$0]  (!%p913_p11), %s911_s4, 128, %s917_s25, %s149_s5  }
  0x48   : > { %p1034_p5 = scmp.ne.s32.totalorder %s1029_s20, 0 }
  0x49   : > { %s947_s30 = sand.u32 (!%p1034_p5), 1, %s771_s13   ;;  %p1035_p0 = scmp.ne.s32.totalorder (!%p1034_p5), %s1027_s18, 0 }
  0x4a   : > { %168 = sbr.rel (%p1034_p5) target bundleno = 441 (0x1b9), region = 32  ;;  %s552_s22 = sshll.u32 (!%p1034_p5), %s947_s30, 3 }
  0x4b   : > { %s171_s6 = scalar_lea.sflag (!%p1034_p5), [#allocation3], %s947_s30  ;;  %s174_s7 = scalar_lea.vmem (!%p1034_p5), [#allocation2], %s552_s22 }
  0x51   : > { %754 = dma.done.wait (%p1035_p0), %s171_s6, 128  }
  0x52   : > { %756 = vsyncadd (%p1035_p0), %s171_s6, 4294967168  ;;  %p1036_p11 = scmp.eq.s32.totalorder %s832_s16, 0 }
  0x54   : > { %758 = dma.done.wait (%p1036_p11), [#allocation6], 384   ;;  %p1037_p1 = pmov %p1036_p11 }
  0x55   : > { %v785_v0 = vmov 0.0   ;;  %vm786_vm0 = vmmov 0   ;;  %v787_v1 = vmov 0   ;;  %vm213_vm1 = vcmask 64512   ;;  %v201_v2 = vld [vmem:[%s174_s7] sm:$0xff]  ;;  %v203_v3 = vld [vmem:[#allocation5 + $0x8] sm:$0xff] }
  0x56   : > { %760 = vsyncadd (%p1037_p1), [#allocation6], 4294966912  ;;  %570 = vmatprep.subr.mxu0 %v785_v0  ;;  %572 = vmatprep.mubr.msk.f32.mxu0 %vm786_vm0, %v785_v0  ;;  %s788_s18 = smov 1   ;;  %v442_v4 = vld [vmem:[%s1022_s2] sm:$0xff]  ;;  %s789_s25 = smov 127   ;;  %v204_v5 = vlaneseq  ;;  %v212_v7 = vld [vmem:[#allocation5] sm:$0xff] }
  0x57   : > { %575 = vmatprep.subr.mxu1 %v785_v0  ;;  %577 = vmatprep.mubr.msk.f32.mxu1 %vm786_vm0, %v785_v0  ;;  %v367_v9 = vld [vmem:[#allocation5 + $0x10] sm:$0xff]  ;;  %s561_s26 = sshll.u32 %s832_s16, 7  ;;  %s200_s5 = scalar_lea.vmem [#allocation7], %s552_s22 }
  0x58   : > { %649 = vset.pattern.permute.xlu1 %v787_v1  ;;  %650 = vset.pattern.permute.xlu0 %v787_v1  ;;  %v205_v6 = vand.u32 127, %v204_v5  ;;  %s465_s8 = sshll.u32 %s200_s5, 4  ;;  %s976_s11 = scalar_lea.hbm %s1023_s3, %s561_s26  ;;  %s978_s8 = int_to_ptr.vmem [resolvable:$true] %s465_s8 }
  0x59   : > { %206 = vrot.lane.b32.xlu0 %v201_v2, %s788_s18  ;;  %576 = vmatpush3.msra.mxu1 %v201_v2  ;;  %s452_s27 = scalar_lea.sflag [#allocation4], %s947_s30  ;;  %s709_s28 = scalar_lea.vmem %s978_s8, 128 }
  0x5a   : > { %578 = vmatmul.mubr.msk.f32.vlgmr.msra.gmra.mrb[0].mxu1 %vm213_vm1, %v203_v3  ;;  %445 = vperm.xlu1 %649, %v442_v4   ;;  %vm208_vm2 = vcmp.ge.s32.totalorder %v205_v6, 1  ;;  %vm362_vm3 = vcmp.lt.s32.totalorder %v205_v6, 127  ;;  %p710_p4 = scmp.ne.s32.totalorder %s978_s8, %s709_s28  ;;  %s790_s16 = smov [#allocation7]  }
  0x5b   : > { %s713_s29 = sshll.u32 %s790_s16, 4  ;;  %s714_s29 = int_to_ptr.vmem [resolvable:$false] %s713_s29 }
  0x5c   : > { %p711_p6 = pnand %p710_p4, %p902_p12  ;;  %s715_s23 = scalar_lea.vmem %s714_s29, 256 }
  0x5d   : > { %360 = vrot.lane.b32.xlu0 %v201_v2, %s789_s25  ;;  %p716_p10 = scmp.lt.s32.totalorder %s978_s8, %s714_s29  ;;  %p717_p13 = scmp.lt.s32.totalorder %s715_s23, %s709_s28 }
  0x5e   : > { %p712_p8 = pneg %p711_p6 }
  0x5f   : > { %p718_p3 = por %p717_p13, %p716_p10 }
  0x61   : > { %p719_p7 = pnand %p718_p3, %p712_p8 }
  0xcb   : > { %v207_v8 = vpop.permute.xlu0 %206 }
  0xcc   : > { %571 = vmatpush3.msk.msra.mxu0 %vm208_vm2, %v207_v8 }
  0xcd   : > { %573 = vmatmul.mubr.msk.f32.vlgmr.msra.gmra.mrb[0].mxu0 %vm213_vm1, %v212_v7  ;;  %580 = vmatprep.subr.mxu0 %v785_v0 }
  0xce   : > { %582 = vmatprep.mubr.msk.f32.mxu0 %vm786_vm0, %v785_v0 }
  0xcf   : > { %v361_v10 = vpop.permute.xlu0 %360 }
  0xd0   : > { %581 = vmatpush3.msk.msra.mxu0 %vm362_vm3, %v361_v10 }
  0xd1   : > { %583 = vmatmul.mubr.msk.f32.vlgmr.msra.gmra.mrb[2].mxu0 %vm213_vm1, %v367_v9 }
  0xd9   : > { %v446_v17 = vpop.permute.xlu1 %445 }
 0x12d   : > { %v356_v11 = vpop.f32.mrb[0].mxu1 }
 0x12e   : > { %v579_v12 = vpop.f32.mrb[1].mxu1 }
 0x1a0   : > { %v283_v13 = vpop.f32.mrb[0].mxu0 }
 0x1a1   : > { %v574_v14 = vpop.f32.mrb[1].mxu0  ;;  %v357_v15 = vadd.f32 %v356_v11, %v283_v13 }
 0x1a4   : > { %v437_v16 = vpop.f32.mrb[2].mxu0 }
 0x1a5   : > { %v441_v18 = vadd.f32 %v437_v16, %v357_v15  ;;  %v584_v19 = vpop.f32.mrb[3].mxu0 }
 0x1a7   : > { %v448_v20 = vadd.f32 %v446_v17, %v441_v18 }
 0x1a9   : > { %v449_v21 = vmax.f32 %v448_v20, 0.0 }
 0x1ab   : > { %450 = vst [vmem:[%s200_s5] sm:$0xff] %v449_v21 }
 0x1ac   : > { %722 = shalt.err (!%p719_p7)
}
 0x1ad   : > { %s723_s30 = scalar_lea.hbm %s976_s11, 128  ;;  %s727_s7 = scalar_lea.hbm %s1023_s3, 256 }
 0x1ae   : > { %p724_p9 = scmp.ne.s32.totalorder %s976_s11, %s723_s30  ;;  %p728_p0 = scmp.lt.u32.totalorder %s976_s11, %s1023_s3 }
 0x1af   : > { %p729_p11 = scmp.lt.u32.totalorder %s727_s7, %s723_s30  ;;  %p731_p4 = scmp.lt.u32.totalorder %s723_s30, %s976_s11 }
 0x1b0   : > { %p725_p2 = pnand %p724_p9, %p902_p12 }
 0x1b1   : > { %p730_p1 = por %p729_p11, %p728_p0 }
 0x1b2   : > { %p726_p5 = pneg %p725_p2 }
 0x1b3   : > { %p732_p6 = por %p731_p4, %p730_p1 }
 0x1b5   : > { %p733_p8 = pnand %p732_p6, %p726_p5 }
 0x1b7   : > { %736 = shalt.err (!%p733_p8)
}
 0x1b8   : > { %591 = dma.vmem_to_hbm [thread:$0]  (%p902_p12), %s978_s8, 128, %s976_s11, %s452_s27  }
 0x1b9 PF: > { %s477_s4 = sand.u32 1, %s767_s12   ;;  %p1038_p10 = scmp.ne.s32.totalorder %s1028_s19, 0 }
 0x1ba   : > { %p1039_p13 = scmp.ge.s32.totalorder %s779_s15, 2  ;;  %s478_s25 = scalar_lea.sflag [#allocation4], %s477_s4 }
 0x1bc   : > { %p602_p3 = pnand %p1039_p13, %p1038_p10 }
 0x1be   : > { %762 = dma.done.wait (!%p602_p3), %s478_s25, 128  }
 0x1bf   : > { %764 = vsyncadd (!%p602_p3), %s478_s25, 4294967168  ;;  %p17_p7 = scmp.ge.s32.totalorder %s867_s24, 4   ;;  %s1040_s12 = smov %s771_s13 }
 0x1c0   : > { %s1041_s13 = smov %s775_s14  ;;  %s1042_s14 = smov %s898_s17 }
 0x1c1   : > { %s1043_s15 = smov %s867_s24  ;;  %19 = sbr.rel (!%p17_p7) target bundleno = 6 (0x6), region = 83 }
 0x1c8   :  { %483 = vsyncpa [#allocation3], 1 }
 0x1c9   :  { %485 = vsyncpa [#allocation3 + $0x1], 1 }
 0x1ca   :  { %486 = vsyncpa [#allocation6], 1 }
 0x1cb   :  { %487 = vsyncpa [#allocation4], 1 }
 0x1cc   :  { %489 = vsyncpa [#allocation4 + $0x1], 1 }

</bundles_post_ra>
